<compile_context>
chip_gen: v6e
topology: v6e:2x2x1
jax: 0.10.0
libtpu: 0.0.40
codegen_flags: <defaults>
</compile_context>

<pallas_src>
import jax
import jax.numpy as jnp
from jax import lax
from jax.experimental import pallas as pl
from jax.experimental.pallas import tpu as pltpu

LANES = 128            # TPU lane width (last block dim)
SUBLANES = 8           # f32 sublane count (one vreg = (8, 128))
MAX_TILE_ROWS = 4096   # 2 MiB f32 per input block
MIN_SPLIT_ROWS = 2048  # >= ~1 MiB per input before splitting across 2 TCs


def _round_down8(n):
    return (n // 8) * 8


def _make_kernel(rows, tile_r, n_inner, needs_mask):
    """Builds the streaming-reduction kernel (static config closed over)."""

    def kernel(x_ref, y_ref, o_ref, acc_ref):
        c = pl.program_id(0)   # outer ("parallel") chunk
        i = pl.program_id(1)   # inner ("arbitrary") reduction step

        @pl.when(i == 0)
        def _init():
            acc_ref[...] = jnp.zeros_like(acc_ref)

        # Stream native-dtype tiles; cast to f32 on the VPU.
        x = x_ref[...].astype(jnp.float32)
        y = y_ref[...].astype(jnp.float32)
        d = y - x
        t = y * jnp.log(x) * d * d

        if needs_mask:
            # Zero contributions from rows at/after the static end of the data
            # (ragged last block + the clamped duplicate grid slot).  Any
            # NaN/Inf produced by log() on garbage rows lives only in the
            # unselected branch of the select and never propagates.
            row0 = (c * n_inner + i) * tile_r          # UNclamped block start
            rid = lax.broadcasted_iota(jnp.int32, (tile_r, LANES), 0)
            t = jnp.where(rid + row0 < rows, t, 0.0)

        # vreg-sized accumulation: fold (tile_r,128) -> (8,128) with pure VPU
        # vreg adds (no XLU, no full-tile accumulator load/store traffic).
        acc_ref[...] += jnp.sum(
            t.reshape(tile_r // SUBLANES, SUBLANES, LANES), axis=0)

        @pl.when(i == n_inner - 1)
        def _finalize():
            o_ref[...] = acc_ref[...]

    return kernel


def my_loss_focus(x, y, *, max_tile_rows=MAX_TILE_ROWS):
    """Computes -(y * log(x) * (y - x)**2).sum(1).mean() for 2-D x, y."""
    assert x.shape == y.shape and x.ndim == 2
    N, C = x.shape
    total = N * C

    xf = x.reshape(-1)
    yf = y.reshape(-1)

    rows = total // LANES
    if rows < SUBLANES:
        rows = 0               # too small for an (8,128)-tiled kernel pass
    kern_elems = rows * LANES

    # --- sub-block remainder (< 8*128+127 elems): tiny plain-XLA reduction ---
    if kern_elems < total:
        xt = xf[kern_elems:].astype(jnp.float32)
        yt = yf[kern_elems:].astype(jnp.float32)
        dt = yt - xt
        tail_sum = jnp.sum(yt * jnp.log(xt) * dt * dt)
    else:
        tail_sum = jnp.float32(0.0)

    if rows == 0:
        # Degenerate tiny input: everything handled by the XLA tail above.
        return -(tail_sum / jnp.float32(N))

    x2 = xf[:kern_elems].reshape(rows, LANES)
    y2 = yf[:kern_elems].reshape(rows, LANES)

    # --- blocking -------------------------------------------------------------
    max_tile = max(SUBLANES, _round_down8(max_tile_rows))   # keep multiple of 8
    n_outer = 2 if rows >= MIN_SPLIT_ROWS else 1
    # Largest multiple-of-8 tile that is <= rows/n_outer and <= max_tile, so
    # every outer chunk gets at least one real block and blocks stay >=512 KiB
    # when split across two TensorCores.
    tile_r = min(max_tile, _round_down8(rows // n_outer))
    nb = -(-rows // tile_r)              # real row-blocks (last may be ragged)
    n_inner = -(-nb // n_outer)          # grid slots per outer chunk
    needs_mask = (n_outer * n_inner * tile_r) != rows

    def in_map(c, i):
        # Clamp the (at most one) excess grid slot to the previous slot's
        # block: same block index as the prior step, so Pallas elides the
        # duplicate DMA; its contribution is zeroed by the in-kernel row mask.
        return (jnp.minimum(c * n_inner + i, nb - 1), 0)

    kernel = _make_kernel(rows, tile_r, n_inner, needs_mask)

    partials = pl.pallas_call(
        kernel,
        out_shape=jax.ShapeDtypeStruct((n_outer * SUBLANES, LANES), jnp.float32),
        grid_spec=pltpu.PrefetchScalarGridSpec(
            num_scalar_prefetch=0,
            grid=(n_outer, n_inner),
            in_specs=[
                pl.BlockSpec((tile_r, LANES), in_map),
                pl.BlockSpec((tile_r, LANES), in_map),
            ],
            out_specs=pl.BlockSpec((SUBLANES, LANES), lambda c, i: (c, 0)),
            scratch_shapes=[pltpu.VMEM((SUBLANES, LANES), jnp.float32)],
        ),
        compiler_params=pltpu.CompilerParams(
            dimension_semantics=("parallel", "arbitrary"),
            vmem_limit_bytes=32 * 1024 * 1024,
        ),
    )(x2, y2)

    total_sum = jnp.sum(partials) + tail_sum
    return -(total_sum / jnp.float32(N))


if __name__ == "__main__":
    key = jax.random.PRNGKey(0)
    kx, ky, kx2, ky2 = jax.random.split(key, 4)

    # (batch, features) with the sum taken over features, like the module.
    N, C = 16, 128
    x = jax.random.uniform(kx, (N, C), dtype=jnp.float32, minval=0.05, maxval=0.95)
    y = jax.random.uniform(ky, (N, C), dtype=jnp.float32, minval=0.0, maxval=1.0)

    loss = my_loss_focus(x, y)
    jax.block_until_ready(loss)
    ref = jnp.mean(jnp.sum(-(y * jnp.log(x) * (y - x) ** 2), axis=1))
    assert jnp.allclose(loss, ref, rtol=1e-5, atol=1e-5), (loss, ref)

    # Ragged shape: exercises the in-kernel partial-block mask + XLA tail peel.
    N2, C2 = 13, 100
    x_b = jax.random.uniform(kx2, (N2, C2), dtype=jnp.float32, minval=0.05, maxval=0.95)
    y_b = jax.random.uniform(ky2, (N2, C2), dtype=jnp.float32, minval=0.0, maxval=1.0)
    loss_b = my_loss_focus(x_b, y_b)
    jax.block_until_ready(loss_b)
    ref_b = jnp.mean(jnp.sum(-(y_b * jnp.log(x_b) * (y_b - x_b) ** 2), axis=1))
    assert jnp.allclose(loss_b, ref_b, rtol=1e-5, atol=1e-5), (loss_b, ref_b)

    print("KERNEL_OK")
</pallas_src>

<mosaic_0001>
module attributes {stable_mosaic.version = 11 : i64} {
  func.func @kernel(%arg0: i32, %arg1: i32, %arg2: memref<16x128xf32, #tpu.memory_space<vmem>>, %arg3: memref<16x128xf32, #tpu.memory_space<vmem>>, %arg4: memref<8x128xf32, #tpu.memory_space<vmem>>, %arg5: memref<8x128xf32, #tpu.memory_space<vmem>>) attributes {dimension_semantics = [#tpu.dimension_semantics<parallel>, #tpu.dimension_semantics<arbitrary>], iteration_bounds = array<i64: 1, 1>, scalar_prefetch = 0 : i64, scratch_operands = 1 : i64, tpu.core_type = #tpu.core_type<tc>, window_params = [{transform_indices = @transform_0, window_bounds = array<i64: 16, 128>}, {transform_indices = @transform_1, window_bounds = array<i64: 16, 128>}, {transform_indices = @transform_2, window_bounds = array<i64: 8, 128>}]} {
    %c0_i32 = arith.constant 0 : i32
    %0 = arith.cmpi eq, %arg1, %c0_i32 : i32
    %1 = arith.extui %0 : i1 to i32
    %c0_i32_0 = arith.constant 0 : i32
    %2 = arith.cmpi ne, %1, %c0_i32_0 : i32
    scf.if %2 {
      %cst_10 = arith.constant 0.000000e+00 : f32
      %18 = vector.broadcast %cst_10 : f32 to vector<8x128xf32>
      %c0_11 = arith.constant 0 : index
      %c0_12 = arith.constant 0 : index
      %19 = vector.load %arg5[%c0_11, %c0_12] : memref<8x128xf32, #tpu.memory_space<vmem>>, vector<8x128xf32>
      tpu.vector_store %arg5[%c0_11, %c0_12], %18 {strides = array<i32>} : memref<8x128xf32, #tpu.memory_space<vmem>>, vector<8x128xf32>,
    } else {
    }
    %c0 = arith.constant 0 : index
    %c0_1 = arith.constant 0 : index
    %3 = vector.load %arg2[%c0, %c0_1] : memref<16x128xf32, #tpu.memory_space<vmem>>, vector<16x128xf32>
    %c0_2 = arith.constant 0 : index
    %c0_3 = arith.constant 0 : index
    %4 = vector.load %arg3[%c0_2, %c0_3] : memref<16x128xf32, #tpu.memory_space<vmem>>, vector<16x128xf32>
    %5 = arith.subf %4, %3 : vector<16x128xf32>
    %6 = math.log %3 : vector<16x128xf32>
    %7 = arith.mulf %4, %6 : vector<16x128xf32>
    %8 = arith.mulf %7, %5 : vector<16x128xf32>
    %9 = arith.mulf %8, %5 : vector<16x128xf32>
    %c0_4 = arith.constant 0 : index
    %c0_5 = arith.constant 0 : index
    %10 = vector.load %arg5[%c0_4, %c0_5] : memref<8x128xf32, #tpu.memory_space<vmem>>, vector<8x128xf32>
    %11 = vector.shape_cast %9 : vector<16x128xf32> to vector<2x8x128xf32>
    %cst = arith.constant dense<0.000000e+00> : vector<8x128xf32>
    %12 = vector.multi_reduction <add>, %11, %cst [0] : vector<2x8x128xf32> to vector<8x128xf32>
    %13 = arith.addf %10, %12 : vector<8x128xf32>
    %c0_6 = arith.constant 0 : index
    %c0_7 = arith.constant 0 : index
    %14 = vector.load %arg5[%c0_6, %c0_7] : memref<8x128xf32, #tpu.memory_space<vmem>>, vector<8x128xf32>
    tpu.vector_store %arg5[%c0_6, %c0_7], %13 {strides = array<i32>} : memref<8x128xf32, #tpu.memory_space<vmem>>, vector<8x128xf32>,
    %c0_i32_8 = arith.constant 0 : i32
    %15 = arith.cmpi eq, %arg1, %c0_i32_8 : i32
    %16 = arith.extui %15 : i1 to i32
    %c0_i32_9 = arith.constant 0 : i32
    %17 = arith.cmpi ne, %16, %c0_i32_9 : i32
    scf.if %17 {
      %c0_10 = arith.constant 0 : index
      %c0_11 = arith.constant 0 : index
      %18 = vector.load %arg5[%c0_10, %c0_11] : memref<8x128xf32, #tpu.memory_space<vmem>>, vector<8x128xf32>
      %c0_12 = arith.constant 0 : index
      %c0_13 = arith.constant 0 : index
      %19 = vector.load %arg4[%c0_12, %c0_13] : memref<8x128xf32, #tpu.memory_space<vmem>>, vector<8x128xf32>
      tpu.vector_store %arg4[%c0_12, %c0_13], %18 {strides = array<i32>} : memref<8x128xf32, #tpu.memory_space<vmem>>, vector<8x128xf32>,
    } else {
    }
    return
  }
  func.func @transform_0(%arg0: i32, %arg1: i32) -> (i32, i32) {
    %c1_i32 = arith.constant 1 : i32
    %0 = arith.muli %arg0, %c1_i32 : i32
    %1 = arith.addi %0, %arg1 : i32
    %c0_i32 = arith.constant 0 : i32
    %2 = arith.minsi %1, %c0_i32 : i32
    %c0_i32_0 = arith.constant 0 : i32
    %c0_i32_1 = arith.constant 0 : i32
    return %2, %c0_i32_0 : i32, i32
  }
  func.func @transform_1(%arg0: i32, %arg1: i32) -> (i32, i32) {
    %c1_i32 = arith.constant 1 : i32
    %0 = arith.muli %arg0, %c1_i32 : i32
    %1 = arith.addi %0, %arg1 : i32
    %c0_i32 = arith.constant 0 : i32
    %2 = arith.minsi %1, %c0_i32 : i32
    %c0_i32_0 = arith.constant 0 : i32
    %c0_i32_1 = arith.constant 0 : i32
    return %2, %c0_i32_0 : i32, i32
  }
  func.func @transform_2(%arg0: i32, %arg1: i32) -> (i32, i32) {
    %c0_i32 = arith.constant 0 : i32
    %c0_i32_0 = arith.constant 0 : i32
    return %arg0, %c0_i32 : i32, i32
  }
}

</mosaic_0001>

<bundles_post_ra>
// kernel: tpu_custom_call.1
= control target key start
LH: loop header
LB: loop body
LE: loop exit
PB: predicated region body
PF: predicated region fallthrough
CT: control target
= control target key end

     0   :  { %7 = vsyncpa [#allocation4], 0  ;;  %s214_s0 = inlined_call_operand.hbm [shape: f32[16,128], index: 0, kind: input, shape index: {}]   ;;  %s215_s1 = inlined_call_operand.hbm [shape: f32[16,128], index: 1, kind: input, shape index: {}]   ;;  %s216_s2 = inlined_call_operand.hbm [shape: f32[8,128], index: 2, kind: output, shape index: {}]  }
   0x1   :  { %8 = vsyncpa [#allocation7], 0 }
   0x2   :  { %9 = vsyncpa [#allocation5], 0  ;;  %s185_s9 = smov [#allocation3]  }
   0x3   :  { %s21_s10 = sshll.u32 %s185_s9, 4  ;;  %s22_s10 = int_to_ptr.vmem [resolvable:$true] %s21_s10 }
   0x4   :  { %s127_s11 = scalar_lea.vmem %s22_s10, 256  ;;  %p132_p1 = scmp.lt.s32.totalorder %s22_s10, %s22_s10 }
   0x5   :  { %p128_p0 = scmp.ne.s32.totalorder %s22_s10, %s127_s11  ;;  %p133_p2 = scmp.lt.s32.totalorder %s127_s11, %s127_s11 }
   0x7   :  { %p134_p3 = por %p133_p2, %p132_p1 }
   0x9   :  { %p135_p4 = pnand %p134_p3, %p128_p0 }
   0xb   :  { %138 = shalt.err (!%p135_p4)
}
   0xc   :  { %s186_s12 = smov 128   ;;  %s187_s13 = smov 8  }
   0xd   :  { %27 = dma.hbm_to_vmem [thread:$0]  %s214_s0, 256, %s22_s10, [#allocation4], %s186_s12, %s186_s12, %s187_s13  }
   0xe   :  { %s188_s16 = smov [#allocation6]  }
   0xf   :  { %s39_s17 = sshll.u32 %s188_s16, 4  ;;  %s40_s17 = int_to_ptr.vmem [resolvable:$true] %s39_s17 }
  0x10   :  { %s147_s18 = scalar_lea.vmem %s40_s17, 256  ;;  %p152_p6 = scmp.lt.s32.totalorder %s40_s17, %s40_s17 }
  0x11   :  { %p148_p5 = scmp.ne.s32.totalorder %s40_s17, %s147_s18  ;;  %p153_p7 = scmp.lt.s32.totalorder %s147_s18, %s147_s18 }
  0x13   :  { %p154_p8 = por %p153_p7, %p152_p6 }
  0x15   :  { %p155_p9 = pnand %p154_p8, %p148_p5 }
  0x17   :  { %158 = shalt.err (!%p155_p9)
}
  0x18   :  { %45 = dma.hbm_to_vmem [thread:$0]  %s215_s1, 256, %s40_s17, [#allocation7], %s186_s12, %s186_s12, %s187_s13  }
  0x19   :  { %179 = dma.done.wait [#allocation4], 256  }
  0x1a   :  { %180 = vsyncadd [#allocation4], 4294967040 }
  0x1b   :  { %181 = dma.done.wait [#allocation7], 256  }
  0x1c   :  { %182 = vsyncadd [#allocation7], 4294967040  ;;  %v65_v0 = vld [vmem:[#allocation3] sm:$0xff]  ;;  %v66_v1 = vld [vmem:[#allocation3 + $0x8] sm:$0xff]  ;;  %s189_s0 = smov [#allocation8]  }
  0x1d   :  { %115 = vlog2.f32 %v65_v0  ;;  %v67_v2 = vld [vmem:[#allocation6] sm:$0xff]  ;;  %v68_v3 = vld [vmem:[#allocation6 + $0x8] sm:$0xff]  ;;  %s96_s1 = sshll.u32 %s189_s0, 4  ;;  %s97_s1 = int_to_ptr.vmem [resolvable:$true] %s96_s1 }
  0x1e   :  { %117 = vlog2.f32 %v66_v1  ;;  %v69_v6 = vsub.f32 %v67_v2, %v65_v0  ;;  %v70_v8 = vsub.f32 %v68_v3, %v66_v1  ;;  %s159_s21 = scalar_lea.vmem %s97_s1, 128  ;;  %p164_p11 = scmp.lt.s32.totalorder %s97_s1, %s97_s1 }
  0x1f   :  { %p160_p10 = scmp.ne.s32.totalorder %s97_s1, %s159_s21  ;;  %p165_p12 = scmp.lt.s32.totalorder %s159_s21, %s159_s21 }
  0x21   :  { %p166_p13 = por %p165_p12, %p164_p11 }
  0x23   :  { %p167_p0 = pnand %p166_p13, %p160_p10 }
  0x2a   :  { %v116_v4 = vpop.eup %115 }
  0x2b   :  { %v118_v5 = vpop.eup %117  ;;  %v72_v7 = vmul.f32 0.6931472, %v116_v4 }
  0x2c   :  { %v74_v9 = vmul.f32 0.6931472, %v118_v5 }
  0x2d   :  { %v75_v10 = vmul.f32 %v72_v7, %v67_v2 }
  0x2e   :  { %v76_v11 = vmul.f32 %v74_v9, %v68_v3 }
  0x2f   :  { %v77_v12 = vmul.f32 %v75_v10, %v69_v6 }
  0x30   :  { %v78_v13 = vmul.f32 %v76_v11, %v70_v8 }
  0x31   :  { %v79_v14 = vmul.f32 %v77_v12, %v69_v6 }
  0x32   :  { %v80_v15 = vmul.f32 %v78_v13, %v70_v8 }
  0x34   :  { %v82_v16 = vadd.f32 %v80_v15, %v79_v14 }
  0x36   :  { %89 = vst [vmem:[#allocation8] sm:$0xff] %v82_v16 }
  0x37   :  { %170 = shalt.err (!%p167_p0)
}
  0x38   :  { %99 = dma.vmem_to_hbm [thread:$0]  %s97_s1, 128, %s216_s2, [#allocation5]  }
  0x39   :  { %183 = dma.done.wait [#allocation5], 128  }
  0x3a   :  { %184 = vsyncadd [#allocation5], 4294967168 }
  0x3b   :  { %103 = vsyncpa [#allocation4], 1 }
  0x3c   :  { %104 = vsyncpa [#allocation7], 1 }
  0x3d   :  { %105 = vsyncpa [#allocation5], 1 }

</bundles_post_ra>
